<compile_context>
chip_gen: v6e
topology: v6e:2x2x1
jax: 0.10.0
libtpu: 0.0.40
codegen_flags: <defaults>
</compile_context>

<pallas_src>
import jax
import jax.numpy as jnp
from jax.experimental import pallas as pl
from jax.experimental.pallas import tpu as pltpu


# Whole-batch single invocation up to this size; 1024-row tiles above it.
_MAX_BLOCK_M = 1024


def _mlp_head_kernel(x_ref, w1_ref, b1_ref, w2_ref, b2_ref, w3_ref, b3_ref, o_ref):
    # MXU operands in bf16 (native rate on v5e/v6e/v7x), accumulation in f32.
    # Bias add / ReLU / Tanh stay in f32.
    x = x_ref[...].astype(jnp.bfloat16)
    # Layer 1: Linear + ReLU
    h1 = jnp.dot(x, w1_ref[...], preferred_element_type=jnp.float32)
    h1 = jnp.maximum(h1 + b1_ref[...], 0.0)
    # Layer 2: Linear + ReLU
    h2 = jnp.dot(h1.astype(jnp.bfloat16), w2_ref[...],
                 preferred_element_type=jnp.float32)
    h2 = jnp.maximum(h2 + b2_ref[...], 0.0)
    # Output layer: Linear + Tanh (action_squash=True)
    out = jnp.dot(h2.astype(jnp.bfloat16), w3_ref[...],
                  preferred_element_type=jnp.float32)
    out = jnp.tanh(out + b3_ref[...])
    o_ref[...] = out.astype(o_ref.dtype)


@jax.jit
def deterministic_head_mu(x, w1, b1, w2, b2, w3, b3):
    """Computes mu = net(x) with the whole MLP fused in one Pallas kernel."""
    B, d_in = x.shape
    d_h = w1.shape[1]
    d_out = w3.shape[1]

    # Weights -> bf16 once per call (tiny, ~45 KB total); biases stay f32 and
    # are reshaped to (1, dim) rows so they broadcast over the batch tile.
    w1b = w1.astype(jnp.bfloat16)
    w2b = w2.astype(jnp.bfloat16)
    w3b = w3.astype(jnp.bfloat16)
    b1r = b1.reshape(1, d_h).astype(jnp.float32)
    b2r = b2.reshape(1, d_h).astype(jnp.float32)
    b3r = b3.reshape(1, d_out).astype(jnp.float32)

    # Tile selection (static at trace time):
    #  - B <= 1024: whole batch in a single invocation (grid=(1,)).
    #  - B  > 1024: 1024-row tiles; grid = cdiv(B, 1024), ragged last block is
    #    handled by Pallas (padded reads, masked writes) -- no pad/slice copies.
    block_m = B if B <= _MAX_BLOCK_M else _MAX_BLOCK_M
    grid = (pl.cdiv(B, block_m),)

    flops = 2 * B * (d_in * d_h + d_h * d_h + d_h * d_out)
    bytes_accessed = (
        B * (d_in + d_out) * 4                                  # x (f32) + mu (f32)
        + (d_in * d_h + d_h * d_h + d_h * d_out) * 2            # bf16 weights
        + (2 * d_h + d_out) * 4                                 # f32 biases
    )

    mu = pl.pallas_call(
        _mlp_head_kernel,
        out_shape=jax.ShapeDtypeStruct((B, d_out), x.dtype),
        grid_spec=pltpu.PrefetchScalarGridSpec(
            num_scalar_prefetch=0,
            grid=grid,
            in_specs=[
                pl.BlockSpec((block_m, d_in), lambda i: (i, 0)),   # x tile
                pl.BlockSpec((d_in, d_h), lambda i: (0, 0)),       # W1 (resident)
                pl.BlockSpec((1, d_h), lambda i: (0, 0)),          # b1
                pl.BlockSpec((d_h, d_h), lambda i: (0, 0)),        # W2 (resident)
                pl.BlockSpec((1, d_h), lambda i: (0, 0)),          # b2
                pl.BlockSpec((d_h, d_out), lambda i: (0, 0)),      # W3 (resident)
                pl.BlockSpec((1, d_out), lambda i: (0, 0)),        # b3
            ],
            out_specs=pl.BlockSpec((block_m, d_out), lambda i: (i, 0)),
        ),
        compiler_params=pltpu.CompilerParams(
            dimension_semantics=("parallel",),  # batch axis shards across TCs
        ),
        cost_estimate=pl.CostEstimate(
            flops=flops,
            transcendentals=B * d_out,          # tanh
            bytes_accessed=bytes_accessed,
        ),
    )(x, w1b, b1r, w2b, b2r, w3b, b3r)
    return mu


def deterministic_head_forward(x, params, stddev=None):
    """Mirrors DeterministicHead.forward: returns (mu, std).

    std is a scalar (broadcastable against mu) rather than a full (B, d_out)
    constant tensor; together (mu, std) parameterize TruncatedNormal.
    """
    mu = deterministic_head_mu(x, *params)
    std_val = 0.1 if stddev is None else stddev
    std = jnp.asarray(std_val, dtype=mu.dtype)
    return mu, std


def init_params(key, input_size, output_size, hidden_size):
    """Deterministic param init (Kaiming-uniform-ish, like nn.Linear default)."""
    sizes = [input_size, hidden_size, hidden_size, output_size]
    keys = jax.random.split(key, 2 * (len(sizes) - 1))
    params = []
    for li in range(len(sizes) - 1):
        fan_in, fan_out = sizes[li], sizes[li + 1]
        bound = 1.0 / (fan_in ** 0.5)
        w = jax.random.uniform(
            keys[2 * li], (fan_in, fan_out), jnp.float32, -bound, bound
        )
        b = jax.random.uniform(
            keys[2 * li + 1], (fan_out,), jnp.float32, -bound, bound
        )
        params += [w, b]
    return tuple(params)


def reference_forward(x, params):
    """Pure f32 reference (kernel uses bf16 matmul operands -> loose tolerance)."""
    w1, b1, w2, b2, w3, b3 = params
    h = jnp.maximum(x @ w1 + b1, 0.0)
    h = jnp.maximum(h @ w2 + b2, 0.0)
    return jnp.tanh(h @ w3 + b3)


if __name__ == "__main__":
    input_size, hidden_size, output_size = 32, 128, 16
    key = jax.random.PRNGKey(0)
    k_x, k_p, k_x2 = jax.random.split(key, 3)
    params = init_params(k_p, input_size, output_size, hidden_size)

    # Tolerances account for bf16 matmul operands (f32 accumulation).
    ATOL = RTOL = 3e-2

    # --- Small batch: single-invocation path (grid=(1,), whole batch resident) ---
    batch = 16
    x = jax.random.normal(k_x, (batch, input_size), jnp.float32)
    mu, std = deterministic_head_forward(x, params, stddev=None)
    mu = jax.block_until_ready(mu)

    mu_ref = reference_forward(x, params)
    assert mu.shape == (batch, output_size)
    assert jnp.allclose(mu, mu_ref, atol=ATOL, rtol=RTOL)
    assert jnp.allclose(jnp.broadcast_to(std, mu.shape), 0.1)

    # --- Larger, non-divisible batch: tiled path with ragged last block ---
    batch2 = 1500  # > 1024 and not a multiple of 1024 -> grid=(2,), partial tail
    x2 = jax.random.normal(k_x2, (batch2, input_size), jnp.float32)
    mu2, _ = deterministic_head_forward(x2, params)
    mu2 = jax.block_until_ready(mu2)

    mu2_ref = reference_forward(x2, params)
    assert mu2.shape == (batch2, output_size)
    assert jnp.allclose(mu2, mu2_ref, atol=ATOL, rtol=RTOL)

    print("KERNEL_OK")
</pallas_src>

<mosaic_0001>
module attributes {stable_mosaic.version = 11 : i64} {
  func.func @_mlp_head_kernel(%arg0: i32, %arg1: memref<16x32xf32, #tpu.memory_space<vmem>>, %arg2: memref<32x128xbf16, #tpu.memory_space<vmem>>, %arg3: memref<1x128xf32, #tpu.memory_space<vmem>>, %arg4: memref<128x128xbf16, #tpu.memory_space<vmem>>, %arg5: memref<1x128xf32, #tpu.memory_space<vmem>>, %arg6: memref<128x16xbf16, #tpu.memory_space<vmem>>, %arg7: memref<1x16xf32, #tpu.memory_space<vmem>>, %arg8: memref<16x16xf32, #tpu.memory_space<vmem>>) attributes {dimension_semantics = [#tpu.dimension_semantics<parallel>], iteration_bounds = array<i64: 1>, scalar_prefetch = 0 : i64, scratch_operands = 0 : i64, tpu.core_type = #tpu.core_type<tc>, window_params = [{transform_indices = @transform_0, window_bounds = array<i64: 16, 32>}, {pipeline_mode = #tpu.pipeline_mode<synchronous>, transform_indices = @transform_1, window_bounds = array<i64: 32, 128>}, {pipeline_mode = #tpu.pipeline_mode<synchronous>, transform_indices = @transform_2, window_bounds = array<i64: 1, 128>}, {pipeline_mode = #tpu.pipeline_mode<synchronous>, transform_indices = @transform_3, window_bounds = array<i64: 128, 128>}, {pipeline_mode = #tpu.pipeline_mode<synchronous>, transform_indices = @transform_4, window_bounds = array<i64: 1, 128>}, {pipeline_mode = #tpu.pipeline_mode<synchronous>, transform_indices = @transform_5, window_bounds = array<i64: 128, 16>}, {pipeline_mode = #tpu.pipeline_mode<synchronous>, transform_indices = @transform_6, window_bounds = array<i64: 1, 16>}, {transform_indices = @transform_7, window_bounds = array<i64: 16, 16>}]} {
    %c0 = arith.constant 0 : index
    %c0_0 = arith.constant 0 : index
    %0 = vector.load %arg1[%c0, %c0_0] : memref<16x32xf32, #tpu.memory_space<vmem>>, vector<16x32xf32>
    %1 = arith.truncf %0 : vector<16x32xf32> to vector<16x32xbf16>
    %c0_1 = arith.constant 0 : index
    %c0_2 = arith.constant 0 : index
    %2 = vector.load %arg2[%c0_1, %c0_2] : memref<32x128xbf16, #tpu.memory_space<vmem>>, vector<32x128xbf16>
    %cst = arith.constant dense<0.000000e+00> : vector<16x128xf32>
    %3 = tpu.matmul %1, %2, %cst {dimension_numbers = #tpu.dot_dimension_numbers<[1], [0], [0], [1], [0, 0, 1, 1], [], []>} : vector<16x32xbf16>, vector<32x128xbf16>, vector<16x128xf32> -> vector<16x128xf32>
    %c0_3 = arith.constant 0 : index
    %c0_4 = arith.constant 0 : index
    %4 = vector.load %arg3[%c0_3, %c0_4] : memref<1x128xf32, #tpu.memory_space<vmem>>, vector<1x128xf32>
    %5 = vector.broadcast %4 : vector<1x128xf32> to vector<16x128xf32>
    %6 = arith.addf %3, %5 : vector<16x128xf32>
    %cst_5 = arith.constant 0.000000e+00 : f32
    %7 = vector.broadcast %cst_5 : f32 to vector<16x128xf32>
    %8 = arith.maximumf %6, %7 : vector<16x128xf32>
    %9 = arith.truncf %8 : vector<16x128xf32> to vector<16x128xbf16>
    %c0_6 = arith.constant 0 : index
    %c0_7 = arith.constant 0 : index
    %10 = vector.load %arg4[%c0_6, %c0_7] : memref<128x128xbf16, #tpu.memory_space<vmem>>, vector<128x128xbf16>
    %cst_8 = arith.constant dense<0.000000e+00> : vector<16x128xf32>
    %11 = tpu.matmul %9, %10, %cst_8 {dimension_numbers = #tpu.dot_dimension_numbers<[1], [0], [0], [1], [0, 0, 1, 1], [], []>} : vector<16x128xbf16>, vector<128x128xbf16>, vector<16x128xf32> -> vector<16x128xf32>
    %c0_9 = arith.constant 0 : index
    %c0_10 = arith.constant 0 : index
    %12 = vector.load %arg5[%c0_9, %c0_10] : memref<1x128xf32, #tpu.memory_space<vmem>>, vector<1x128xf32>
    %13 = vector.broadcast %12 : vector<1x128xf32> to vector<16x128xf32>
    %14 = arith.addf %11, %13 : vector<16x128xf32>
    %cst_11 = arith.constant 0.000000e+00 : f32
    %15 = vector.broadcast %cst_11 : f32 to vector<16x128xf32>
    %16 = arith.maximumf %14, %15 : vector<16x128xf32>
    %17 = arith.truncf %16 : vector<16x128xf32> to vector<16x128xbf16>
    %c0_12 = arith.constant 0 : index
    %c0_13 = arith.constant 0 : index
    %18 = vector.load %arg6[%c0_12, %c0_13] : memref<128x16xbf16, #tpu.memory_space<vmem>>, vector<128x16xbf16>
    %cst_14 = arith.constant dense<0.000000e+00> : vector<16x16xf32>
    %19 = tpu.matmul %17, %18, %cst_14 {dimension_numbers = #tpu.dot_dimension_numbers<[1], [0], [0], [1], [0, 0, 1, 1], [], []>} : vector<16x128xbf16>, vector<128x16xbf16>, vector<16x16xf32> -> vector<16x16xf32>
    %c0_15 = arith.constant 0 : index
    %c0_16 = arith.constant 0 : index
    %20 = vector.load %arg7[%c0_15, %c0_16] : memref<1x16xf32, #tpu.memory_space<vmem>>, vector<1x16xf32>
    %21 = vector.broadcast %20 : vector<1x16xf32> to vector<16x16xf32>
    %22 = arith.addf %19, %21 : vector<16x16xf32>
    %23 = math.tanh %22 : vector<16x16xf32>
    %c0_17 = arith.constant 0 : index
    %c0_18 = arith.constant 0 : index
    %24 = vector.load %arg8[%c0_17, %c0_18] : memref<16x16xf32, #tpu.memory_space<vmem>>, vector<16x16xf32>
    tpu.vector_store %arg8[%c0_17, %c0_18], %23 {strides = array<i32>} : memref<16x16xf32, #tpu.memory_space<vmem>>, vector<16x16xf32>,
    return
  }
  func.func @transform_0(%arg0: i32) -> (i32, i32) {
    %c0_i32 = arith.constant 0 : i32
    %c0_i32_0 = arith.constant 0 : i32
    return %arg0, %c0_i32 : i32, i32
  }
  func.func @transform_1(%arg0: i32) -> (i32, i32) {
    %c0_i32 = arith.constant 0 : i32
    %c0_i32_0 = arith.constant 0 : i32
    %c0_i32_1 = arith.constant 0 : i32
    return %c0_i32, %c0_i32_0 : i32, i32
  }
  func.func @transform_2(%arg0: i32) -> (i32, i32) {
    %c0_i32 = arith.constant 0 : i32
    %c0_i32_0 = arith.constant 0 : i32
    %c0_i32_1 = arith.constant 0 : i32
    return %c0_i32, %c0_i32_0 : i32, i32
  }
  func.func @transform_3(%arg0: i32) -> (i32, i32) {
    %c0_i32 = arith.constant 0 : i32
    %c0_i32_0 = arith.constant 0 : i32
    %c0_i32_1 = arith.constant 0 : i32
    return %c0_i32, %c0_i32_0 : i32, i32
  }
  func.func @transform_4(%arg0: i32) -> (i32, i32) {
    %c0_i32 = arith.constant 0 : i32
    %c0_i32_0 = arith.constant 0 : i32
    %c0_i32_1 = arith.constant 0 : i32
    return %c0_i32, %c0_i32_0 : i32, i32
  }
  func.func @transform_5(%arg0: i32) -> (i32, i32) {
    %c0_i32 = arith.constant 0 : i32
    %c0_i32_0 = arith.constant 0 : i32
    %c0_i32_1 = arith.constant 0 : i32
    return %c0_i32, %c0_i32_0 : i32, i32
  }
  func.func @transform_6(%arg0: i32) -> (i32, i32) {
    %c0_i32 = arith.constant 0 : i32
    %c0_i32_0 = arith.constant 0 : i32
    %c0_i32_1 = arith.constant 0 : i32
    return %c0_i32, %c0_i32_0 : i32, i32
  }
  func.func @transform_7(%arg0: i32) -> (i32, i32) {
    %c0_i32 = arith.constant 0 : i32
    %c0_i32_0 = arith.constant 0 : i32
    return %arg0, %c0_i32 : i32, i32
  }
}

</mosaic_0001>

<bundles_post_ra>
// kernel: deterministic_head_mu.1
= control target key start
LH: loop header
LB: loop body
LE: loop exit
PB: predicated region body
PF: predicated region fallthrough
CT: control target
= control target key end

     0   :  { %v490_v1 = vmov 0.0   ;;  %vm491_vm0 = vmmov 0   ;;  %vm54_vm1 = vcmask 261120   ;;  %s631_s0 = inlined_call_operand.vmem [shape: f32[16,32], index: 0, kind: input, shape index: {}]   ;;  %s632_s1 = inlined_call_operand.vmem [shape: bf16[32,128], index: 1, kind: input, shape index: {}]   ;;  %s633_s2 = inlined_call_operand.vmem [shape: f32[1,128], index: 2, kind: input, shape index: {}]   ;;  %s634_s3 = inlined_call_operand.vmem [shape: bf16[128,128], index: 3, kind: input, shape index: {}]   ;;  %s635_s4 = inlined_call_operand.vmem [shape: f32[1,128], index: 4, kind: input, shape index: {}]   ;;  %s636_s5 = inlined_call_operand.vmem [shape: bf16[128,16], index: 5, kind: input, shape index: {}]   ;;  %s637_s6 = inlined_call_operand.vmem [shape: f32[1,16], index: 6, kind: input, shape index: {}]   ;;  %s638_s7 = inlined_call_operand.hbm [shape: f32[16,16], index: 7, kind: output, shape index: {}]  }
   0x1   :  { %v446_v0 = vld [vmem:[%s632_s1 + $0x8] sm:$0xff]   ;;  %393 = vmatprep.subr.bf16.mxu0 %v490_v1  ;;  %v447_v2 = vld [vmem:[%s632_s1] sm:$0xff]   ;;  %401 = vmatprep.subr.bf16.mxu1 %v490_v1  ;;  %v448_v5 = vld [vmem:[%s634_s3 + $0x38] sm:$0xff]  }
   0x2   :  { %394 = vmatpush3.bf16.msra.mxu0 %v446_v0  ;;  %397 = vmatprep.mubr.msk.bf16.mxu0 %vm491_vm0, %v490_v1  ;;  %v28_v3 = vld [vmem:[%s631_s0] sm:$0xff]  ;;  %v29_v4 = vld [vmem:[%s631_s0 + $0x8] sm:$0xff]  ;;  %v449_v7 = vld [vmem:[%s634_s3 + $0x30] sm:$0xff]  }
   0x3   :  { %395 = vmatprep.subr.bf16.mxu0 %v490_v1  ;;  %417 = vmatprep.mubr.msk.bf16.mxu1 %vm491_vm0, %v490_v1  ;;  %v30_v6 = vpack.c.bf16 %v29_v4, %v28_v3  ;;  %v450_v8 = vld [vmem:[%s634_s3 + $0x28] sm:$0xff]   ;;  %v451_v9 = vld [vmem:[%s634_s3 + $0x20] sm:$0xff]  }
   0x4   :  { %402 = vmatpush3.bf16.msra.mxu1 %v448_v5 }
   0x5   :  { %403 = vmatprep.subr.bf16.mxu1 %v490_v1 }
   0x6   :  { %396 = vmatpush3.bf16.msra.mxu0 %v447_v2 }
   0x7   :  { %421 = vmatprep.subr.bf16.mxu0 %v490_v1 }
   0x8   :  { %404 = vmatpush3.bf16.msra.mxu1 %v449_v7 }
   0x9   :  { %398 = vmatmul.mubr.msk.bf16.vlgmr.msra.gmra.mxu0 %vm54_vm1, %v30_v6  ;;  %405 = vmatprep.subr.bf16.mxu1 %v490_v1 }
   0xa   :  { %437 = vmatprep.mubr.msk.bf16.mxu0 %vm491_vm0, %v490_v1 }
   0xc   :  { %406 = vmatpush3.bf16.msra.mxu1 %v450_v8 }
   0xd   :  { %407 = vmatprep.subr.bf16.mxu1 %v490_v1 }
   0xe   :  { %12 = vsyncpa [#allocation3], 0  ;;  %v452_v10 = vld [vmem:[%s634_s3 + $0x18] sm:$0xff]   ;;  %v453_v11 = vld [vmem:[%s634_s3 + $0x10] sm:$0xff]   ;;  %vm331_vm2 = vcmask 130048  }
   0xf   :  { %v454_v12 = vld [vmem:[%s634_s3 + $0x8] sm:$0xff]   ;;  %v455_v13 = vld [vmem:[%s634_s3] sm:$0xff]   ;;  %v456_v14 = vld [vmem:[%s636_s5 + $0x38] sm:$0xff]  }
  0x10   :  { %408 = vmatpush3.bf16.msra.mxu1 %v451_v9  ;;  %422 = vmatpush3.bf16.msra.mxu0 %v456_v14  ;;  %v457_v15 = vld [vmem:[%s636_s5 + $0x30] sm:$0xff]   ;;  %v458_v16 = vld [vmem:[%s636_s5 + $0x28] sm:$0xff]   ;;  %v459_v17 = vld [vmem:[%s636_s5 + $0x20] sm:$0xff]  }
  0x11   :  { %409 = vmatprep.subr.bf16.mxu1 %v490_v1  ;;  %423 = vmatprep.subr.bf16.mxu0 %v490_v1  ;;  %v460_v18 = vld [vmem:[%s636_s5 + $0x18] sm:$0xff]   ;;  %v350_v19 = vld [vmem:[%s633_s2] ss:$0 sm:$0xff]  ;;  %v461_v29 = vld [vmem:[%s636_s5 + $0x10] sm:$0xff]  }
  0x12   :  { %v462_v30 = vld [vmem:[%s636_s5 + $0x8] sm:$0xff]   ;;  %v463_v31 = vld [vmem:[%s636_s5] sm:$0xff]  }
  0x13   :  { %v354_v32 = vld [vmem:[%s635_s4] ss:$0 sm:$0xff]  ;;  %s492_s4 = smov [#allocation2]  }
  0x14   :  { %410 = vmatpush3.bf16.msra.mxu1 %v452_v10  ;;  %424 = vmatpush3.bf16.msra.mxu0 %v457_v15  ;;  %v363_v42 = vld [vmem:[%s637_s6] ss:$0 sm:$0xff]  ;;  %s339_s5 = sshll.u32 %s492_s4, 4  ;;  %s340_s5 = int_to_ptr.vmem [resolvable:$true] %s339_s5 }
  0x15   :  { %411 = vmatprep.subr.bf16.mxu1 %v490_v1  ;;  %425 = vmatprep.subr.bf16.mxu0 %v490_v1  ;;  %s468_s18 = scalar_lea.vmem %s340_s5, 256  ;;  %p473_p1 = scmp.lt.s32.totalorder %s340_s5, %s340_s5 }
  0x16   :  { %p469_p0 = scmp.ne.s32.totalorder %s340_s5, %s468_s18  ;;  %p474_p2 = scmp.lt.s32.totalorder %s468_s18, %s468_s18 }
  0x18   :  { %412 = vmatpush3.bf16.msra.mxu1 %v453_v11  ;;  %426 = vmatpush3.bf16.msra.mxu0 %v458_v16  ;;  %p475_p3 = por %p474_p2, %p473_p1 }
  0x19   :  { %413 = vmatprep.subr.bf16.mxu1 %v490_v1  ;;  %427 = vmatprep.subr.bf16.mxu0 %v490_v1 }
  0x1a   :  { %p476_p4 = pnand %p475_p3, %p469_p0 }
  0x1c   :  { %414 = vmatpush3.bf16.msra.mxu1 %v454_v12  ;;  %428 = vmatpush3.bf16.msra.mxu0 %v459_v17 }
  0x1d   :  { %415 = vmatprep.subr.bf16.mxu1 %v490_v1  ;;  %429 = vmatprep.subr.bf16.mxu0 %v490_v1 }
  0x20   :  { %416 = vmatpush3.bf16.msra.mxu1 %v455_v13  ;;  %430 = vmatpush3.bf16.msra.mxu0 %v460_v18 }
  0x21   :  { %431 = vmatprep.subr.bf16.mxu0 %v490_v1 }
  0x24   :  { %432 = vmatpush3.bf16.msra.mxu0 %v461_v29 }
  0x25   :  { %433 = vmatprep.subr.bf16.mxu0 %v490_v1 }
  0x28   :  { %434 = vmatpush3.bf16.msra.mxu0 %v462_v30 }
  0x29   :  { %435 = vmatprep.subr.bf16.mxu0 %v490_v1 }
  0x2c   :  { %436 = vmatpush3.bf16.msra.mxu0 %v463_v31 }
  0xc9   :  { %v92_v20 = vpop.f32.mrf.mxu0 }
  0xca   :  { %v93_v22 = vadd.f32 %v350_v19, %v92_v20 }
  0xcb   :  { %v399_v21 = vpop.f32.mrf.mxu0 }
  0xcc   :  { %v99_v26 = vmax.f32 %v93_v22, 0.0 }
  0xcd   :  { %v95_v23 = vpop.f32.mrf.mxu0 }
  0xce   :  { %v96_v24 = vadd.f32 %v350_v19, %v95_v23 }
  0xcf   :  { %v400_v25 = vpop.f32.mrf.mxu0 }
  0xd0   :  { %v100_v27 = vmax.f32 %v96_v24, 0.0 }
  0xd2   :  { %v101_v28 = vpack.c.bf16 %v100_v27, %v99_v26 }
  0xd4   :  { %418 = vmatmul.mubr.bf16.vlgmr.msra.gmra.mxu1 %v101_v28 }
 0x194   :  { %v207_v33 = vpop.f32.mrf.mxu1 }
 0x195   :  { %v208_v35 = vadd.f32 %v354_v32, %v207_v33 }
 0x196   :  { %v419_v34 = vpop.f32.mrf.mxu1 }
 0x197   :  { %v214_v39 = vmax.f32 %v208_v35, 0.0 }
 0x198   :  { %v210_v36 = vpop.f32.mrf.mxu1 }
 0x199   :  { %v211_v37 = vadd.f32 %v354_v32, %v210_v36 }
 0x19a   :  { %v420_v38 = vpop.f32.mrf.mxu1 }
 0x19b   :  { %v215_v40 = vmax.f32 %v211_v37, 0.0 }
 0x19d   :  { %v216_v41 = vpack.c.bf16 %v215_v40, %v214_v39 }
 0x19f   :  { %438 = vmatmul.mubr.bf16.vlgmr.msra.gmra.mxu0 %v216_v41 }
 0x25f   :  { %v322_v43 = vpop.f32.mrf.mxu0 }
 0x260   :  { %v323_v44 = vadd.f32 %v363_v42, %v322_v43 }
 0x261   :  { %v439_v45 = vpop.f32.mrf.mxu0 }
 0x262   :  { %464 = vtanh.f32 %v323_v44 }
 0x263   :  { %v325_v46 = vpop.f32.mrf.mxu0 }
 0x264   :  { %v326_v47 = vadd.f32 %v363_v42, %v325_v46 }
 0x265   :  { %v440_v48 = vpop.f32.mrf.mxu0 }
 0x266   :  { %466 = vtanh.f32 %v326_v47 }
 0x26f   :  { %v465_v49 = vpop.eup %464 }
 0x270   :  { %332 = vst.msk [vmem:[#allocation2] sm:$0xff] %vm331_vm2, %v465_v49 }
 0x273   :  { %v467_v50 = vpop.eup %466 }
 0x274   :  { %333 = vst.msk [vmem:[#allocation2 + $0x8] sm:$0xff] %vm331_vm2, %v467_v50 }
 0x275   :  { %479 = shalt.err (!%p476_p4)
}
 0x276   :  { %s493_s6 = smov 128   ;;  %s494_s19 = smov 8  }
 0x277   :  { %345 = dma.vmem_to_hbm [thread:$0]  %s340_s5, 256, %s638_s7, [#allocation3], %s493_s6, %s493_s6, %s494_s19  }
 0x278   :  { %488 = dma.done.wait [#allocation3], 256  }
 0x279   :  { %489 = vsyncadd [#allocation3], 4294967040 }
 0x27a   :  { %349 = vsyncpa [#allocation3], 1 }

</bundles_post_ra>
